<compile_context>
chip_gen: v7x
topology: tpu7x:2x2x1
jax: 0.10.0
libtpu: 0.0.40
codegen_flags: <defaults>
</compile_context>

<pallas_src>
import jax
import jax.numpy as jnp
from jax.experimental import pallas as pl
from jax.experimental.pallas import tpu as pltpu


def _round_up(x, m):
    return ((x + m - 1) // m) * m


# ---------------------------------------------------------------------------
# Kernel 1: parallel input projection  gates_x[t, b] = x[t, b] @ W_ih^T + (b_ih + b_hh)
# ---------------------------------------------------------------------------
def _in_proj_kernel(x_ref, w_ref, b_ref, o_ref):
    # x_ref: (1, TILE_B, D), w_ref: (D, 4H), b_ref: (1, 4H), o_ref: (1, TILE_B, 4H)
    o_ref[0] = (jnp.dot(x_ref[0], w_ref[...], preferred_element_type=jnp.float32)
                + b_ref[...])


# ---------------------------------------------------------------------------
# Kernel 2: single-layer LSTM recurrence over padded neighbor sequences.
# ---------------------------------------------------------------------------
def _lstm_kernel(gx_ref, len_ref, whh_ref, out_ref, h_ref, c_ref):
    # gx_ref:  (1, TILE_B, 4H)  precomputed x_t @ W_ih^T + bias
    # len_ref: (TILE_B, 1) i32  valid sequence lengths
    # whh_ref: (H, 4H)          transposed weight_hh_l0 (VMEM-resident)
    # out_ref: (1, TILE_B, H)   hidden state h_t (zeros on padded steps)
    # h_ref/c_ref: (TILE_B, H)  recurrent state, persists across time steps
    t = pl.program_id(1)

    @pl.when(t == 0)
    def _():
        h_ref[...] = jnp.zeros_like(h_ref)
        c_ref[...] = jnp.zeros_like(c_ref)

    hidden = h_ref.shape[-1]
    gates = gx_ref[0] + jnp.dot(h_ref[...], whh_ref[...],
                                preferred_element_type=jnp.float32)   # (TILE_B, 4H)

    # PyTorch LSTM gate order: input, forget, cell, output.
    i_g = jax.nn.sigmoid(gates[:, 0 * hidden:1 * hidden])
    f_g = jax.nn.sigmoid(gates[:, 1 * hidden:2 * hidden])
    g_g = jnp.tanh(gates[:, 2 * hidden:3 * hidden])
    o_g = jax.nn.sigmoid(gates[:, 3 * hidden:4 * hidden])

    c_new = f_g * c_ref[...] + i_g * g_g
    h_new = o_g * jnp.tanh(c_new)

    mask = len_ref[...] > t                                           # (TILE_B, 1)
    c_ref[...] = jnp.where(mask, c_new, c_ref[...])
    h_ref[...] = jnp.where(mask, h_new, h_ref[...])
    out_ref[0] = jnp.where(mask, h_new, 0.0)     # pad_packed_sequence-style zeros


def _lstm_forward(x_btd, lens_b, w_ih, w_hh, bias_4h):
    # x_btd: (B, T, D) f32, lens_b: (B,) int32
    # w_ih: (4H, D), w_hh: (4H, H), bias_4h: (4H,)
    B, T, D = x_btd.shape
    H4 = w_ih.shape[0]
    H = H4 // 4

    tile_b = min(128, _round_up(B, 8))
    B_pad = _round_up(B, tile_b)
    pad_b = B_pad - B

    x_tbd = jnp.transpose(jnp.pad(x_btd, ((0, pad_b), (0, 0), (0, 0))),
                          (1, 0, 2))                                  # (T, B_pad, D)
    lens_b1 = jnp.pad(lens_b.astype(jnp.int32), (0, pad_b))[:, None]  # (B_pad, 1)
    wih_t = jnp.transpose(w_ih).astype(jnp.float32)                   # (D, 4H)
    whh_t = jnp.transpose(w_hh).astype(jnp.float32)                   # (H, 4H)
    bias = bias_4h.reshape(1, H4).astype(jnp.float32)

    # -- parallel input projection (keeps the big D-dim matmul off the serial path)
    gates_x = pl.pallas_call(
        _in_proj_kernel,
        out_shape=jax.ShapeDtypeStruct((T, B_pad, H4), jnp.float32),
        grid_spec=pltpu.PrefetchScalarGridSpec(
            num_scalar_prefetch=0,
            grid=(B_pad // tile_b, T),
            in_specs=[
                pl.BlockSpec((1, tile_b, D), lambda bi, t: (t, bi, 0)),
                pl.BlockSpec((D, H4), lambda bi, t: (0, 0)),
                pl.BlockSpec((1, H4), lambda bi, t: (0, 0)),
            ],
            out_specs=pl.BlockSpec((1, tile_b, H4), lambda bi, t: (t, bi, 0)),
        ),
        compiler_params=pltpu.CompilerParams(
            dimension_semantics=("parallel", "parallel")),
        cost_estimate=pl.CostEstimate(
            flops=2 * T * B_pad * D * H4,
            transcendentals=0,
            bytes_accessed=4 * (T * B_pad * (D + H4) + D * H4 + H4)),
    )(x_tbd, wih_t, bias)

    # -- sequential recurrence (only h @ W_hh + nonlinearities per step)
    hs_tbh = pl.pallas_call(
        _lstm_kernel,
        out_shape=jax.ShapeDtypeStruct((T, B_pad, H), jnp.float32),
        grid_spec=pltpu.PrefetchScalarGridSpec(
            num_scalar_prefetch=0,
            grid=(B_pad // tile_b, T),
            in_specs=[
                pl.BlockSpec((1, tile_b, H4), lambda bi, t: (t, bi, 0)),
                pl.BlockSpec((tile_b, 1), lambda bi, t: (bi, 0)),
                pl.BlockSpec((H, H4), lambda bi, t: (0, 0)),
            ],
            out_specs=pl.BlockSpec((1, tile_b, H), lambda bi, t: (t, bi, 0)),
            scratch_shapes=[pltpu.VMEM((tile_b, H), jnp.float32),
                            pltpu.VMEM((tile_b, H), jnp.float32)],
        ),
        compiler_params=pltpu.CompilerParams(
            dimension_semantics=("parallel", "arbitrary")),   # true recurrence in t
        cost_estimate=pl.CostEstimate(
            flops=2 * T * B_pad * H * H4,
            transcendentals=5 * T * B_pad * H,
            bytes_accessed=4 * (T * B_pad * (H4 + H) + H * H4 + B_pad)),
    )(gates_x, lens_b1, whh_t)

    return jnp.transpose(hs_tbh, (1, 0, 2))[:B]                       # (B, T, H)


# ---------------------------------------------------------------------------
# Kernel 3: per-relation matmul over pre-aggregated node states, fused bias+ReLU.
#   out[n] = relu( sum_r agg[r, n] @ W[r] + bias )
# ---------------------------------------------------------------------------
def _rgc_kernel(agg_ref, w_ref, b_ref, out_ref, acc_ref):
    # agg_ref: (1, TILE_N, H)   sum over edges of (h * adj) per (relation, node)
    # w_ref:   (1, H, O)        rgc_weights[r]
    # b_ref:   (1, O)           rgc_bias (zeros when bias disabled)
    # out_ref: (TILE_N, O)
    r = pl.program_id(1)

    @pl.when(r == 0)
    def _():
        acc_ref[...] = jnp.zeros_like(acc_ref)

    acc_ref[...] += jnp.dot(agg_ref[0], w_ref[0], preferred_element_type=jnp.float32)

    @pl.when(r == pl.num_programs(1) - 1)
    def _():
        out_ref[...] = jnp.maximum(acc_ref[...] + b_ref[...], 0.0)


def _rgc_aggregate(agg_rnh, rgc_weights, rgc_bias, tile_n):
    R, N_pad, H = agg_rnh.shape
    O = rgc_weights.shape[-1]
    return pl.pallas_call(
        _rgc_kernel,
        out_shape=jax.ShapeDtypeStruct((N_pad, O), jnp.float32),
        grid_spec=pltpu.PrefetchScalarGridSpec(
            num_scalar_prefetch=0,
            grid=(N_pad // tile_n, R),
            in_specs=[
                pl.BlockSpec((1, tile_n, H), lambda n, r: (r, n, 0)),
                pl.BlockSpec((1, H, O), lambda n, r: (r, 0, 0)),
                pl.BlockSpec((1, O), lambda n, r: (0, 0)),
            ],
            out_specs=pl.BlockSpec((tile_n, O), lambda n, r: (n, 0)),
            scratch_shapes=[pltpu.VMEM((tile_n, O), jnp.float32)],
        ),
        compiler_params=pltpu.CompilerParams(
            dimension_semantics=("parallel", "arbitrary")),
        cost_estimate=pl.CostEstimate(
            flops=2 * N_pad * R * H * O,
            transcendentals=0,
            bytes_accessed=4 * (R * N_pad * H + R * H * O + N_pad * O + O)),
    )(agg_rnh, rgc_weights.astype(jnp.float32),
      rgc_bias.reshape(1, O).astype(jnp.float32))


# ---------------------------------------------------------------------------
# Full forward (mirrors LSTMRelationalGraphConvolution.forward)
# ---------------------------------------------------------------------------
@jax.jit
def lstm_rgcn_forward(neighbor_po, neighbor_rel, neighbor_len, node_ids,
                      adj, features, w_ih, w_hh, b_ih, b_hh,
                      rgc_weights, rgc_bias):
    num_nodes, in_dim = features.shape
    B, T = neighbor_po.shape
    R, H, O = rgc_weights.shape

    # 1. feature table with a zero pad row at index num_nodes.
    feat_embeddings = jnp.concatenate(
        [features.astype(jnp.float32), jnp.zeros((1, in_dim), jnp.float32)], axis=0)

    # 2. padded neighbor-feature sequences (gather = glue).
    valid = jnp.arange(T, dtype=jnp.int32)[None, :] < neighbor_len[:, None]   # (B, T)
    seq_ids = jnp.where(valid, neighbor_po, num_nodes)
    neighbor_feats = feat_embeddings[seq_ids]                                 # (B, T, in_dim)

    # 3. LSTM over timesteps (Pallas: parallel input projection + serial recurrence).
    hs_bth = _lstm_forward(neighbor_feats, neighbor_len.astype(jnp.int32),
                           w_ih, w_hh, b_ih + b_hh)                           # (B, T, H)

    # 4. flatten every (sampled node, valid timestep) into one edge (s, rel, po)
    #    and pre-aggregate adj-scaled hidden states per (relation, subject node).
    #    By linearity:  sum_e (h_e @ W[rel_e]) * adj = sum_r (sum_{e:rel=r} h_e*adj) @ W[r]
    # TODO(synk): select_max_time_neighbors is not defined in the spec; each valid
    # neighbor timestep is treated as one edge with its LSTM hidden state, matching
    # the aggregation loop output[s] += (emb @ W[rel]) * adj[s, po].
    tile_n = min(256, _round_up(num_nodes, 8))
    N_pad = _round_up(num_nodes, tile_n)

    s_flat = jnp.repeat(node_ids.astype(jnp.int32), T)                        # (B*T,)
    po_flat = neighbor_po.reshape(-1).astype(jnp.int32)
    rel_flat = neighbor_rel.reshape(-1).astype(jnp.int32)
    valid_flat = valid.reshape(-1)
    emb_flat = hs_bth.reshape(B * T, H)
    adjw_flat = jnp.where(valid_flat, adj[s_flat, po_flat].astype(jnp.float32), 0.0)
    scaled = emb_flat * adjw_flat[:, None]          # zeros for padded timesteps

    rel_safe = jnp.where(valid_flat, rel_flat, 0)
    s_safe = jnp.where(valid_flat, s_flat, 0)
    flat_idx = rel_safe * N_pad + s_safe
    # TODO(synk): the data-dependent scatter-add has no clean static Pallas tiling;
    # it stays in XLA (.at[].add). Invalid/padded edges add exact zeros.
    agg = jnp.zeros((R * N_pad, H), jnp.float32).at[flat_idx].add(scaled)
    agg = agg.reshape(R, N_pad, H)

    # 5. per-relation matmul + fused bias + ReLU epilogue (Pallas, MXU).
    out_padded = _rgc_aggregate(agg, rgc_weights, rgc_bias, tile_n)
    return out_padded[:num_nodes]


# ---------------------------------------------------------------------------
# Pure-JAX reference (same semantics) for the runtime correctness check.
# ---------------------------------------------------------------------------
def _reference_forward(neighbor_po, neighbor_rel, neighbor_len, node_ids,
                       adj, features, w_ih, w_hh, b_ih, b_hh,
                       rgc_weights, rgc_bias):
    num_nodes, in_dim = features.shape
    B, T = neighbor_po.shape
    R, H, O = rgc_weights.shape

    feat_emb = jnp.concatenate([features, jnp.zeros((1, in_dim), jnp.float32)], axis=0)
    valid = jnp.arange(T)[None, :] < neighbor_len[:, None]
    seq_ids = jnp.where(valid, neighbor_po, num_nodes)
    x = feat_emb[seq_ids]                                             # (B, T, in_dim)

    h = jnp.zeros((B, H), jnp.float32)
    c = jnp.zeros((B, H), jnp.float32)
    hs = []
    for t in range(T):
        gates = x[:, t] @ w_ih.T + h @ w_hh.T + b_ih + b_hh
        i = jax.nn.sigmoid(gates[:, :H])
        f = jax.nn.sigmoid(gates[:, H:2 * H])
        g = jnp.tanh(gates[:, 2 * H:3 * H])
        o = jax.nn.sigmoid(gates[:, 3 * H:])
        c_new = f * c + i * g
        h_new = o * jnp.tanh(c_new)
        m = valid[:, t][:, None]
        c = jnp.where(m, c_new, c)
        h = jnp.where(m, h_new, h)
        hs.append(jnp.where(m, h_new, 0.0))
    hs = jnp.stack(hs, axis=1)                                        # (B, T, H)

    out = jnp.zeros((num_nodes, O), jnp.float32)
    for b in range(B):
        s = int(node_ids[b])
        for t in range(int(neighbor_len[b])):
            po = int(neighbor_po[b, t])
            rel = int(neighbor_rel[b, t])
            out = out.at[s].add((hs[b, t] @ rgc_weights[rel]) * adj[s, po])
    return jnp.maximum(out + rgc_bias, 0.0)


if __name__ == "__main__":
    key = jax.random.PRNGKey(0)
    keys = jax.random.split(key, 12)

    num_nodes = 12
    num_relations = 5        # original + inverse + self-loop style count (odd)
    in_dim = 32
    hidden_dim = 32
    out_dim = 32
    batch_nodes = 8          # sampled nodes whose neighborhoods are encoded
    max_neighbors = 8

    features = jax.random.normal(keys[0], (num_nodes, in_dim), jnp.float32)
    adj = jax.random.uniform(keys[1], (num_nodes, num_nodes), jnp.float32)

    node_ids = jax.random.randint(keys[2], (batch_nodes,), 0, num_nodes, dtype=jnp.int32)
    neighbor_po = jax.random.randint(keys[3], (batch_nodes, max_neighbors), 0, num_nodes,
                                     dtype=jnp.int32)
    neighbor_rel = jax.random.randint(keys[4], (batch_nodes, max_neighbors), 0, num_relations,
                                      dtype=jnp.int32)
    neighbor_len = jax.random.randint(keys[5], (batch_nodes,), 1, max_neighbors + 1,
                                      dtype=jnp.int32)

    scale = 0.1
    w_ih = scale * jax.random.normal(keys[6], (4 * hidden_dim, in_dim), jnp.float32)
    w_hh = scale * jax.random.normal(keys[7], (4 * hidden_dim, hidden_dim), jnp.float32)
    b_ih = scale * jax.random.normal(keys[8], (4 * hidden_dim,), jnp.float32)
    b_hh = scale * jax.random.normal(keys[9], (4 * hidden_dim,), jnp.float32)
    rgc_weights = scale * jax.random.normal(keys[10], (num_relations, hidden_dim, out_dim),
                                            jnp.float32)
    rgc_bias = scale * jax.random.normal(keys[11], (out_dim,), jnp.float32)

    out = lstm_rgcn_forward(neighbor_po, neighbor_rel, neighbor_len, node_ids,
                            adj, features, w_ih, w_hh, b_ih, b_hh,
                            rgc_weights, rgc_bias)
    out = jax.block_until_ready(out)

    ref = _reference_forward(neighbor_po, neighbor_rel, neighbor_len, node_ids,
                             adj, features, w_ih, w_hh, b_ih, b_hh,
                             rgc_weights, rgc_bias)

    assert out.shape == (num_nodes, out_dim)
    max_err = float(jnp.max(jnp.abs(out - ref)))
    assert jnp.allclose(out, ref, atol=1e-4, rtol=1e-4), f"max |err| = {max_err}"

    print("KERNEL_OK")
</pallas_src>

<mosaic_0001>
module attributes {stable_mosaic.version = 11 : i64} {
  func.func @_in_proj_kernel(%arg0: i32, %arg1: i32, %arg2: memref<1x8x32xf32, #tpu.memory_space<vmem>>, %arg3: memref<32x128xf32, #tpu.memory_space<vmem>>, %arg4: memref<1x128xf32, #tpu.memory_space<vmem>>, %arg5: memref<1x8x128xf32, #tpu.memory_space<vmem>>) attributes {dimension_semantics = [#tpu.dimension_semantics<parallel>, #tpu.dimension_semantics<parallel>], iteration_bounds = array<i64: 1, 8>, scalar_prefetch = 0 : i64, scratch_operands = 0 : i64, tpu.core_type = #tpu.core_type<tc>, window_params = [{transform_indices = @transform_0, window_bounds = array<i64: 1, 8, 32>}, {pipeline_mode = #tpu.pipeline_mode<synchronous>, transform_indices = @transform_1, window_bounds = array<i64: 32, 128>}, {pipeline_mode = #tpu.pipeline_mode<synchronous>, transform_indices = @transform_2, window_bounds = array<i64: 1, 128>}, {transform_indices = @transform_3, window_bounds = array<i64: 1, 8, 128>}]} {
    %c0 = arith.constant 0 : index
    %c0_0 = arith.constant 0 : index
    %c0_1 = arith.constant 0 : index
    %0 = vector.load %arg2[%c0, %c0_0, %c0_1] : memref<1x8x32xf32, #tpu.memory_space<vmem>>, vector<1x8x32xf32>
    %1 = vector.shape_cast %0 : vector<1x8x32xf32> to vector<8x32xf32>
    %c0_2 = arith.constant 0 : index
    %c0_3 = arith.constant 0 : index
    %2 = vector.load %arg3[%c0_2, %c0_3] : memref<32x128xf32, #tpu.memory_space<vmem>>, vector<32x128xf32>
    %cst = arith.constant dense<0.000000e+00> : vector<8x128xf32>
    %3 = tpu.matmul %1, %2, %cst {dimension_numbers = #tpu.dot_dimension_numbers<[1], [0], [0], [1], [0, 0, 1, 1], [], []>} : vector<8x32xf32>, vector<32x128xf32>, vector<8x128xf32> -> vector<8x128xf32>
    %c0_4 = arith.constant 0 : index
    %c0_5 = arith.constant 0 : index
    %4 = vector.load %arg4[%c0_4, %c0_5] : memref<1x128xf32, #tpu.memory_space<vmem>>, vector<1x128xf32>
    %5 = vector.broadcast %4 : vector<1x128xf32> to vector<8x128xf32>
    %6 = arith.addf %3, %5 : vector<8x128xf32>
    %c0_6 = arith.constant 0 : index
    %c0_7 = arith.constant 0 : index
    %c0_8 = arith.constant 0 : index
    %7 = vector.load %arg5[%c0_6, %c0_7, %c0_8] : memref<1x8x128xf32, #tpu.memory_space<vmem>>, vector<1x8x128xf32>
    %8 = vector.shape_cast %7 : vector<1x8x128xf32> to vector<8x128xf32>
    %9 = vector.shape_cast %6 : vector<8x128xf32> to vector<1x8x128xf32>
    tpu.vector_store %arg5[%c0_6, %c0_7, %c0_8], %9 {strides = array<i32>} : memref<1x8x128xf32, #tpu.memory_space<vmem>>, vector<1x8x128xf32>,
    return
  }
  func.func @transform_0(%arg0: i32, %arg1: i32) -> (i32, i32, i32) {
    %c0_i32 = arith.constant 0 : i32
    %c0_i32_0 = arith.constant 0 : i32
    return %arg1, %arg0, %c0_i32 : i32, i32, i32
  }
  func.func @transform_1(%arg0: i32, %arg1: i32) -> (i32, i32) {
    %c0_i32 = arith.constant 0 : i32
    %c0_i32_0 = arith.constant 0 : i32
    %c0_i32_1 = arith.constant 0 : i32
    return %c0_i32, %c0_i32_0 : i32, i32
  }
  func.func @transform_2(%arg0: i32, %arg1: i32) -> (i32, i32) {
    %c0_i32 = arith.constant 0 : i32
    %c0_i32_0 = arith.constant 0 : i32
    %c0_i32_1 = arith.constant 0 : i32
    return %c0_i32, %c0_i32_0 : i32, i32
  }
  func.func @transform_3(%arg0: i32, %arg1: i32) -> (i32, i32, i32) {
    %c0_i32 = arith.constant 0 : i32
    %c0_i32_0 = arith.constant 0 : i32
    return %arg1, %arg0, %c0_i32 : i32, i32, i32
  }
}

module attributes {stable_mosaic.version = 11 : i64} {
  func.func @_lstm_kernel(%arg0: i32, %arg1: i32, %arg2: memref<1x8x128xf32, #tpu.memory_space<vmem>>, %arg3: memref<8x1xi32, #tpu.memory_space<vmem>>, %arg4: memref<32x128xf32, #tpu.memory_space<vmem>>, %arg5: memref<1x8x32xf32, #tpu.memory_space<vmem>>, %arg6: memref<8x32xf32, #tpu.memory_space<vmem>>, %arg7: memref<8x32xf32, #tpu.memory_space<vmem>>) attributes {dimension_semantics = [#tpu.dimension_semantics<parallel>, #tpu.dimension_semantics<arbitrary>], iteration_bounds = array<i64: 1, 8>, scalar_prefetch = 0 : i64, scratch_operands = 2 : i64, tpu.core_type = #tpu.core_type<tc>, window_params = [{transform_indices = @transform_0, window_bounds = array<i64: 1, 8, 128>}, {transform_indices = @transform_1, window_bounds = array<i64: 8, 1>}, {pipeline_mode = #tpu.pipeline_mode<synchronous>, transform_indices = @transform_2, window_bounds = array<i64: 32, 128>}, {transform_indices = @transform_3, window_bounds = array<i64: 1, 8, 32>}]} {
    %c0_i32 = arith.constant 0 : i32
    %0 = arith.cmpi eq, %arg1, %c0_i32 : i32
    %1 = arith.extui %0 : i1 to i32
    %c0_i32_0 = arith.constant 0 : i32
    %2 = arith.cmpi ne, %1, %c0_i32_0 : i32
    scf.if %2 {
      %cst_26 = arith.constant 0.000000e+00 : f32
      %55 = vector.broadcast %cst_26 : f32 to vector<8x32xf32>
      %c0_27 = arith.constant 0 : index
      %c0_28 = arith.constant 0 : index
      %56 = vector.load %arg6[%c0_27, %c0_28] : memref<8x32xf32, #tpu.memory_space<vmem>>, vector<8x32xf32>
      tpu.vector_store %arg6[%c0_27, %c0_28], %55 {strides = array<i32>} : memref<8x32xf32, #tpu.memory_space<vmem>>, vector<8x32xf32>,
      %cst_29 = arith.constant 0.000000e+00 : f32
      %57 = vector.broadcast %cst_29 : f32 to vector<8x32xf32>
      %c0_30 = arith.constant 0 : index
      %c0_31 = arith.constant 0 : index
      %58 = vector.load %arg7[%c0_30, %c0_31] : memref<8x32xf32, #tpu.memory_space<vmem>>, vector<8x32xf32>
      tpu.vector_store %arg7[%c0_30, %c0_31], %57 {strides = array<i32>} : memref<8x32xf32, #tpu.memory_space<vmem>>, vector<8x32xf32>,
    } else {
    }
    %c0 = arith.constant 0 : index
    %c0_1 = arith.constant 0 : index
    %c0_2 = arith.constant 0 : index
    %3 = vector.load %arg2[%c0, %c0_1, %c0_2] : memref<1x8x128xf32, #tpu.memory_space<vmem>>, vector<1x8x128xf32>
    %4 = vector.shape_cast %3 : vector<1x8x128xf32> to vector<8x128xf32>
    %c0_3 = arith.constant 0 : index
    %c0_4 = arith.constant 0 : index
    %5 = vector.load %arg6[%c0_3, %c0_4] : memref<8x32xf32, #tpu.memory_space<vmem>>, vector<8x32xf32>
    %c0_5 = arith.constant 0 : index
    %c0_6 = arith.constant 0 : index
    %6 = vector.load %arg4[%c0_5, %c0_6] : memref<32x128xf32, #tpu.memory_space<vmem>>, vector<32x128xf32>
    %cst = arith.constant dense<0.000000e+00> : vector<8x128xf32>
    %7 = tpu.matmul %5, %6, %cst {dimension_numbers = #tpu.dot_dimension_numbers<[1], [0], [0], [1], [0, 0, 1, 1], [], []>} : vector<8x32xf32>, vector<32x128xf32>, vector<8x128xf32> -> vector<8x128xf32>
    %8 = arith.addf %4, %7 : vector<8x128xf32>
    %9 = vector.extract_strided_slice %8 {offsets = [0, 0], sizes = [8, 32], strides = [1, 1]} : vector<8x128xf32> to vector<8x32xf32>
    %10 = arith.negf %9 : vector<8x32xf32>
    %11 = math.exp %10 : vector<8x32xf32>
    %cst_7 = arith.constant 1.000000e+00 : f32
    %12 = vector.broadcast %cst_7 : f32 to vector<8x32xf32>
    %13 = arith.addf %12, %11 : vector<8x32xf32>
    %14 = arith.divf %12, %13 : vector<8x32xf32>
    %15 = vector.extract_strided_slice %8 {offsets = [0, 32], sizes = [8, 32], strides = [1, 1]} : vector<8x128xf32> to vector<8x32xf32>
    %16 = arith.negf %15 : vector<8x32xf32>
    %17 = math.exp %16 : vector<8x32xf32>
    %cst_8 = arith.constant 1.000000e+00 : f32
    %18 = vector.broadcast %cst_8 : f32 to vector<8x32xf32>
    %19 = arith.addf %18, %17 : vector<8x32xf32>
    %20 = arith.divf %18, %19 : vector<8x32xf32>
    %21 = vector.extract_strided_slice %8 {offsets = [0, 64], sizes = [8, 32], strides = [1, 1]} : vector<8x128xf32> to vector<8x32xf32>
    %22 = math.tanh %21 : vector<8x32xf32>
    %23 = vector.extract_strided_slice %8 {offsets = [0, 96], sizes = [8, 32], strides = [1, 1]} : vector<8x128xf32> to vector<8x32xf32>
    %24 = arith.negf %23 : vector<8x32xf32>
    %25 = math.exp %24 : vector<8x32xf32>
    %cst_9 = arith.constant 1.000000e+00 : f32
    %26 = vector.broadcast %cst_9 : f32 to vector<8x32xf32>
    %27 = arith.addf %26, %25 : vector<8x32xf32>
    %28 = arith.divf %26, %27 : vector<8x32xf32>
    %c0_10 = arith.constant 0 : index
    %c0_11 = arith.constant 0 : index
    %29 = vector.load %arg7[%c0_10, %c0_11] : memref<8x32xf32, #tpu.memory_space<vmem>>, vector<8x32xf32>
    %30 = arith.mulf %20, %29 : vector<8x32xf32>
    %31 = arith.mulf %14, %22 : vector<8x32xf32>
    %32 = arith.addf %30, %31 : vector<8x32xf32>
    %33 = math.tanh %32 : vector<8x32xf32>
    %34 = arith.mulf %28, %33 : vector<8x32xf32>
    %c0_12 = arith.constant 0 : index
    %c0_13 = arith.constant 0 : index
    %35 = vector.load %arg3[%c0_12, %c0_13] : memref<8x1xi32, #tpu.memory_space<vmem>>, vector<8x1xi32>
    %36 = vector.broadcast %arg1 : i32 to vector<8x1xi32>
    %37 = arith.cmpi sgt, %35, %36 : vector<8x1xi32>
    %c0_14 = arith.constant 0 : index
    %c0_15 = arith.constant 0 : index
    %38 = vector.load %arg7[%c0_14, %c0_15] : memref<8x32xf32, #tpu.memory_space<vmem>>, vector<8x32xf32>
    %39 = vector.shape_cast %37 : vector<8x1xi1> to vector<8x1xi1>
    %40 = vector.broadcast %39 : vector<8x1xi1> to vector<8x32xi1>
    %41 = arith.select %40, %32, %38 : vector<8x32xi1>, vector<8x32xf32>
    %c0_16 = arith.constant 0 : index
    %c0_17 = arith.constant 0 : index
    %42 = vector.load %arg7[%c0_16, %c0_17] : memref<8x32xf32, #tpu.memory_space<vmem>>, vector<8x32xf32>
    tpu.vector_store %arg7[%c0_16, %c0_17], %41 {strides = array<i32>} : memref<8x32xf32, #tpu.memory_space<vmem>>, vector<8x32xf32>,
    %c0_18 = arith.constant 0 : index
    %c0_19 = arith.constant 0 : index
    %43 = vector.load %arg6[%c0_18, %c0_19] : memref<8x32xf32, #tpu.memory_space<vmem>>, vector<8x32xf32>
    %44 = vector.shape_cast %37 : vector<8x1xi1> to vector<8x1xi1>
    %45 = vector.broadcast %44 : vector<8x1xi1> to vector<8x32xi1>
    %46 = arith.select %45, %34, %43 : vector<8x32xi1>, vector<8x32xf32>
    %c0_20 = arith.constant 0 : index
    %c0_21 = arith.constant 0 : index
    %47 = vector.load %arg6[%c0_20, %c0_21] : memref<8x32xf32, #tpu.memory_space<vmem>>, vector<8x32xf32>
    tpu.vector_store %arg6[%c0_20, %c0_21], %46 {strides = array<i32>} : memref<8x32xf32, #tpu.memory_space<vmem>>, vector<8x32xf32>,
    %cst_22 = arith.constant 0.000000e+00 : f32
    %48 = vector.shape_cast %37 : vector<8x1xi1> to vector<8x1xi1>
    %49 = vector.broadcast %48 : vector<8x1xi1> to vector<8x32xi1>
    %50 = vector.broadcast %cst_22 : f32 to vector<8x32xf32>
    %51 = arith.select %49, %34, %50 : vector<8x32xi1>, vector<8x32xf32>
    %c0_23 = arith.constant 0 : index
    %c0_24 = arith.constant 0 : index
    %c0_25 = arith.constant 0 : index
    %52 = vector.load %arg5[%c0_23, %c0_24, %c0_25] : memref<1x8x32xf32, #tpu.memory_space<vmem>>, vector<1x8x32xf32>
    %53 = vector.shape_cast %52 : vector<1x8x32xf32> to vector<8x32xf32>
    %54 = vector.shape_cast %51 : vector<8x32xf32> to vector<1x8x32xf32>
    tpu.vector_store %arg5[%c0_23, %c0_24, %c0_25], %54 {strides = array<i32>} : memref<1x8x32xf32, #tpu.memory_space<vmem>>, vector<1x8x32xf32>,
    return
  }
  func.func @transform_0(%arg0: i32, %arg1: i32) -> (i32, i32, i32) {
    %c0_i32 = arith.constant 0 : i32
    %c0_i32_0 = arith.constant 0 : i32
    return %arg1, %arg0, %c0_i32 : i32, i32, i32
  }
  func.func @transform_1(%arg0: i32, %arg1: i32) -> (i32, i32) {
    %c0_i32 = arith.constant 0 : i32
    %c0_i32_0 = arith.constant 0 : i32
    return %arg0, %c0_i32 : i32, i32
  }
  func.func @transform_2(%arg0: i32, %arg1: i32) -> (i32, i32) {
    %c0_i32 = arith.constant 0 : i32
    %c0_i32_0 = arith.constant 0 : i32
    %c0_i32_1 = arith.constant 0 : i32
    return %c0_i32, %c0_i32_0 : i32, i32
  }
  func.func @transform_3(%arg0: i32, %arg1: i32) -> (i32, i32, i32) {
    %c0_i32 = arith.constant 0 : i32
    %c0_i32_0 = arith.constant 0 : i32
    return %arg1, %arg0, %c0_i32 : i32, i32, i32
  }
}

module attributes {stable_mosaic.version = 11 : i64} {
  func.func @_rgc_kernel(%arg0: i32, %arg1: i32, %arg2: memref<1x16x32xf32, #tpu.memory_space<vmem>>, %arg3: memref<1x32x32xf32, #tpu.memory_space<vmem>>, %arg4: memref<1x32xf32, #tpu.memory_space<vmem>>, %arg5: memref<16x32xf32, #tpu.memory_space<vmem>>, %arg6: memref<16x32xf32, #tpu.memory_space<vmem>>) attributes {dimension_semantics = [#tpu.dimension_semantics<parallel>, #tpu.dimension_semantics<arbitrary>], iteration_bounds = array<i64: 1, 5>, scalar_prefetch = 0 : i64, scratch_operands = 1 : i64, tpu.core_type = #tpu.core_type<tc>, window_params = [{transform_indices = @transform_0, window_bounds = array<i64: 1, 16, 32>}, {transform_indices = @transform_1, window_bounds = array<i64: 1, 32, 32>}, {pipeline_mode = #tpu.pipeline_mode<synchronous>, transform_indices = @transform_2, window_bounds = array<i64: 1, 32>}, {transform_indices = @transform_3, window_bounds = array<i64: 16, 32>}]} {
    %c0_i32 = arith.constant 0 : i32
    %0 = arith.cmpi eq, %arg1, %c0_i32 : i32
    %1 = arith.extui %0 : i1 to i32
    %c0_i32_0 = arith.constant 0 : i32
    %2 = arith.cmpi ne, %1, %c0_i32_0 : i32
    scf.if %2 {
      %cst_11 = arith.constant 0.000000e+00 : f32
      %14 = vector.broadcast %cst_11 : f32 to vector<16x32xf32>
      %c0_12 = arith.constant 0 : index
      %c0_13 = arith.constant 0 : index
      %15 = vector.load %arg6[%c0_12, %c0_13] : memref<16x32xf32, #tpu.memory_space<vmem>>, vector<16x32xf32>
      tpu.vector_store %arg6[%c0_12, %c0_13], %14 {strides = array<i32>} : memref<16x32xf32, #tpu.memory_space<vmem>>, vector<16x32xf32>,
    } else {
    }
    %c0 = arith.constant 0 : index
    %c0_1 = arith.constant 0 : index
    %3 = vector.load %arg6[%c0, %c0_1] : memref<16x32xf32, #tpu.memory_space<vmem>>, vector<16x32xf32>
    %c0_2 = arith.constant 0 : index
    %c0_3 = arith.constant 0 : index
    %c0_4 = arith.constant 0 : index
    %4 = vector.load %arg2[%c0_2, %c0_3, %c0_4] : memref<1x16x32xf32, #tpu.memory_space<vmem>>, vector<1x16x32xf32>
    %5 = vector.shape_cast %4 : vector<1x16x32xf32> to vector<16x32xf32>
    %c0_5 = arith.constant 0 : index
    %c0_6 = arith.constant 0 : index
    %c0_7 = arith.constant 0 : index
    %6 = vector.load %arg3[%c0_5, %c0_6, %c0_7] : memref<1x32x32xf32, #tpu.memory_space<vmem>>, vector<1x32x32xf32>
    %7 = vector.shape_cast %6 : vector<1x32x32xf32> to vector<32x32xf32>
    %cst = arith.constant dense<0.000000e+00> : vector<16x32xf32>
    %8 = tpu.matmul %5, %7, %cst {dimension_numbers = #tpu.dot_dimension_numbers<[1], [0], [0], [1], [0, 0, 1, 1], [], []>} : vector<16x32xf32>, vector<32x32xf32>, vector<16x32xf32> -> vector<16x32xf32>
    %9 = arith.addf %3, %8 : vector<16x32xf32>
    %c0_8 = arith.constant 0 : index
    %c0_9 = arith.constant 0 : index
    %10 = vector.load %arg6[%c0_8, %c0_9] : memref<16x32xf32, #tpu.memory_space<vmem>>, vector<16x32xf32>
    tpu.vector_store %arg6[%c0_8, %c0_9], %9 {strides = array<i32>} : memref<16x32xf32, #tpu.memory_space<vmem>>, vector<16x32xf32>,
    %c4_i32 = arith.constant 4 : i32
    %11 = arith.cmpi eq, %arg1, %c4_i32 : i32
    %12 = arith.extui %11 : i1 to i32
    %c0_i32_10 = arith.constant 0 : i32
    %13 = arith.cmpi ne, %12, %c0_i32_10 : i32
    scf.if %13 {
      %c0_11 = arith.constant 0 : index
      %c0_12 = arith.constant 0 : index
      %14 = vector.load %arg6[%c0_11, %c0_12] : memref<16x32xf32, #tpu.memory_space<vmem>>, vector<16x32xf32>
      %c0_13 = arith.constant 0 : index
      %c0_14 = arith.constant 0 : index
      %15 = vector.load %arg4[%c0_13, %c0_14] : memref<1x32xf32, #tpu.memory_space<vmem>>, vector<1x32xf32>
      %16 = vector.broadcast %15 : vector<1x32xf32> to vector<16x32xf32>
      %17 = arith.addf %14, %16 : vector<16x32xf32>
      %cst_15 = arith.constant 0.000000e+00 : f32
      %18 = vector.broadcast %cst_15 : f32 to vector<16x32xf32>
      %19 = arith.maximumf %17, %18 : vector<16x32xf32>
      %c0_16 = arith.constant 0 : index
      %c0_17 = arith.constant 0 : index
      %20 = vector.load %arg5[%c0_16, %c0_17] : memref<16x32xf32, #tpu.memory_space<vmem>>, vector<16x32xf32>
      tpu.vector_store %arg5[%c0_16, %c0_17], %19 {strides = array<i32>} : memref<16x32xf32, #tpu.memory_space<vmem>>, vector<16x32xf32>,
    } else {
    }
    return
  }
  func.func @transform_0(%arg0: i32, %arg1: i32) -> (i32, i32, i32) {
    %c0_i32 = arith.constant 0 : i32
    %c0_i32_0 = arith.constant 0 : i32
    return %arg1, %arg0, %c0_i32 : i32, i32, i32
  }
  func.func @transform_1(%arg0: i32, %arg1: i32) -> (i32, i32, i32) {
    %c0_i32 = arith.constant 0 : i32
    %c0_i32_0 = arith.constant 0 : i32
    %c0_i32_1 = arith.constant 0 : i32
    return %arg1, %c0_i32, %c0_i32_0 : i32, i32, i32
  }
  func.func @transform_2(%arg0: i32, %arg1: i32) -> (i32, i32) {
    %c0_i32 = arith.constant 0 : i32
    %c0_i32_0 = arith.constant 0 : i32
    %c0_i32_1 = arith.constant 0 : i32
    return %c0_i32, %c0_i32_0 : i32, i32
  }
  func.func @transform_3(%arg0: i32, %arg1: i32) -> (i32, i32) {
    %c0_i32 = arith.constant 0 : i32
    %c0_i32_0 = arith.constant 0 : i32
    return %arg0, %c0_i32 : i32, i32
  }
}

</mosaic_0001>

<bundles_post_ra>
// kernel: lstm_rgcn_forward.4
= control target key start
LH: loop header
LB: loop body
LE: loop exit
PB: predicated region body
PF: predicated region fallthrough
CT: control target
= control target key end

     0   :  { %s581_s12 = smov 0   ;;  %s583_s13 = smov 0   ;;  %s646_s0 = inlined_call_operand.vmem [shape: f32[8,8,128], index: 0, kind: input, shape index: {}]   ;;  %s647_s1 = inlined_call_operand.vmem [shape: s32[8,1], index: 1, kind: input, shape index: {}]   ;;  %s648_s2 = inlined_call_operand.vmem [shape: f32[32,128], index: 2, kind: input, shape index: {}]   ;;  %s649_s3 = inlined_call_operand.vmem [shape: f32[8,8,32], index: 3, kind: output, shape index: {}]  }
   0x1   :  { %s585_s14 = smov 0  }
   0x2 LB: > { %s22_s15 = sadd.s32 1, %s547_s13  ;;  %p457_p0 = scmp.ge.s32.totalorder %s551_s14, 1  ;;  %s551_s14 = sphi %s585_s14, %s13_s14   ;;  %s547_s13 = sphi %s583_s13, %s651_s13   ;;  %s543_s12 = sphi %s581_s12, %s650_s12  }
   0x3   : > { %p23_p1 = scmp.ge.s32.totalorder %s22_s15, 8  ;;  %p164_p2 = scmp.lt.s32.totalorder %s551_s14, 9 }
   0x5   : > { %s653_s15 = smov (%p23_p1, %s22_s15), 0  ;;  %p165_p3 = pnand %p457_p0, %p164_p2 }
   0x6   : > { %p196_p4 = scmp.lt.s32.totalorder (!%p165_p3), %s543_s12, 7  ;;  %p460_p5 = scmp.ne.s32.totalorder (!%p165_p3), %s543_s12, 0 }
   0x7   : > { %168 = sbr.rel (%p165_p3) target bundleno = 736 (0x2e0), region = 32 }
   0xe   : > { %s197_s16 = scalar_select %p196_p4, %s543_s12, 7 }
   0xf   : > { %217 = sbr.rel (%p460_p5) target bundleno = 22 (0x16), region = 36  ;;  %vm218_vm0 = vcmask (!%p460_p5), 261120   ;;  %v553_v0 = vmov (!%p460_p5), 0.0  }
  0x10   : > { %s458_s17 = sshll.u32 %s197_s16, 3  ;;  %219 = vst.msk [vmem:[#allocation2] sm:$0xff] (!%p460_p5), %vm218_vm0, %v553_v0  ;;  %220 = vst.msk [vmem:[#allocation3] sm:$0xff] (!%p460_p5), %vm218_vm0, %v553_v0 }
  0x11   : > { %s202_s20 = scalar_lea.vmem %s646_s0, %s458_s17  ;;  %s609_s23 = scalar_lea.vmem %s649_s3, %s458_s17 }
  0x16 PF: > { %v223_v1 = vld [vmem:[%s648_s2] sm:$0xff]  ;;  %v224_v2 = vld [vmem:[%s648_s2 + $0x8] sm:$0xff]  ;;  %v225_v3 = vld [vmem:[%s648_s2 + $0x10] sm:$0xff]  ;;  %v554_v4 = vmov 0.0|0.0   ;;  %vm555_vm1 = vmmov 0   ;;  %v556_v7 = vmov 0.0   ;;  %v332_v21 = vstv %s543_s12 }
  0x17   : > { %481 = vmatprep.subr.bf16.mxu0 %v554_v4  ;;  %v482_v5 = vpack.c.bf16 %v224_v2, %v223_v1  ;;  %v226_v6 = vld [vmem:[%s648_s2 + $0x18] sm:$0xff]  ;;  %478 = vmatprep.mubr.msk.f32.mxu0 %vm555_vm1, %v556_v7  ;;  %v222_v9 = vld [vmem:[#allocation2] sm:$0xff]  ;;  %vm227_vm2 = vcmask 261120   ;;  %v557_v14 = vmov 0   ;;  %s558_s5 = smov 64   ;;  %v309_v16 = vld [vmem:[#allocation3] sm:$0xff] }
  0x18   : > { %v485_v8 = vpack.c.bf16 %v226_v6, %v225_v3  ;;  %v221_v10 = vld [vmem:[%s202_s20] sm:$0xff]  ;;  %519 = vset.pattern.permute.xlu1 %v557_v14  ;;  %520 = vset.pattern.permute.xlu0 %v557_v14  ;;  %s559_s6 = smov 32   ;;  %s560_s9 = smov 96  }
  0x19   : > { %483 = vmatpush3.bf16.msra.mxu0 %v482_v5  ;;  %v331_v20 = vld [vmem:[%s647_s1] sm:$0xff] }
  0x1a   : > { %484 = vmatprep.subr.bf16.mxu0 %v554_v4  ;;  %vm333_vm3 = vcmp.gt.s32.totalorder %v331_v20, %v332_v21 }
  0x1b   : > { %v334_v25 = vsel %vm333_vm3, 1, %v557_v14 }
  0x1d   : > { %486 = vmatpush3.bf16.msra.mxu0 %v485_v8 }
  0x20   : > { %479 = vmatmul.mubr.msk.f32.vlgmr.msra.gmra.mrb[0].mxu0 %vm227_vm2, %v222_v9 }
  0xf3   : > { %v297_v11 = vpop.f32.mrb[0].mxu0 }
  0xf4   : > { %v301_v12 = vadd.f32 %v297_v11, %v221_v10  ;;  %v480_v13 = vpop.f32.mrb[1].mxu0 }
  0xf6   : > { %521 = vtanh.f32 %v301_v12  ;;  %v462_v17 = vmul.f32 -1.442695, %v301_v12 }
  0xf8   : > { %523 = vpow2.f32 %v462_v17 }
 0x100   : > { %v522_v15 = vpop.eup %521 }
 0x101   : > { %316 = vrot.lane.b32.xlu0 %v522_v15, %s558_s5 }
 0x102   : > { %v524_v18 = vpop.eup %523 }
 0x103   : > { %v305_v19 = vadd.f32 1.0, %v524_v18 }
 0x105   : > { %311 = vrot.lane.b32.xlu0 %v309_v16, %s559_s6  ;;  %525 = vrcp.f32 %v305_v19 }
 0x10f   : > { %v526_v22 = vpop.eup %525 }
 0x173   : > { %v317_v23 = vpop.permute.xlu0 %316 }
 0x174   : > { %v319_v24 = vmul.f32 %v526_v22, %v317_v23 }
 0x176   : > { %321 = vrot.lane.b32.xlu1 %v319_v24, %s559_s6 }
 0x177   : > { %v312_v26 = vpop.permute.xlu0 %311 }
 0x178   : > { %v314_v27 = vmul.f32 %v526_v22, %v312_v26 }
 0x17a   : > { %336 = vperm.xlu1 %519, %v334_v25  }
 0x17e   : > { %347 = vrot.lane.b32.xlu1 %v222_v9, %s560_s9 }
 0x1e8   : > { %v322_v28 = vpop.permute.xlu1 %321 }
 0x1e9   : > { %v324_v29 = vadd.f32 %v322_v28, %v314_v27 }
 0x1eb   : > { %527 = vtanh.f32 %v324_v29 }
 0x1f5   : > { %v528_v30 = vpop.eup %527 }
 0x1f6   : > { %327 = vrot.lane.b32.xlu0 %v528_v30, %s558_s5 }
 0x1f9   : > { %v337_v31 = vpop.permute.xlu1 %336 }
 0x1fa   : > { %vm338_vm4 = vcmp.eq.s32.totalorder %v337_v31, 1 }
 0x1fb   : > { %v339_v32 = vsel %vm338_vm4, %v324_v29, %v312_v26 }
 0x1fc   : > { %341 = vrot.lane.b32.xlu0 %v339_v32, %s560_s9 }
 0x1fd   : > { %v348_v34 = vpop.permute.xlu1 %347 }
 0x268   : > { %v328_v33 = vpop.permute.xlu0 %327 }
 0x269   : > { %v330_v35 = vmul.f32 %v526_v22, %v328_v33 }
 0x26b   : > { %v356_v36 = vsel %vm338_vm4, %v330_v35, 0.0  ;;  %v350_v37 = vsel %vm338_vm4, %v330_v35, %v348_v34 }
 0x26c   : > { %358 = vrot.lane.b32.xlu0 %v356_v36, %s559_s6  ;;  %352 = vrot.lane.b32.xlu1 %v350_v37, %s559_s6 }
 0x26e   : > { %v342_v38 = vpop.permute.xlu0 %341 }
 0x26f   : > { %344 = vst.msk [vmem:[#allocation3] sm:$0xff] %vm227_vm2, %v342_v38 }
 0x2de   : > { %v353_v39 = vpop.permute.xlu1 %352  ;;  %v359_v40 = vpop.permute.xlu0 %358 }
 0x2df   : > { %355 = vst.msk [vmem:[#allocation2] sm:$0xff] %vm227_vm2, %v353_v39  ;;  %361 = vst.msk [vmem:[%s609_s23] sm:$0xff] %vm227_vm2, %v359_v40 }
 0x2e0 PF: > { %s13_s14 = sadd.s32 1, %s551_s14   ;;  %s650_s12 = smov %s547_s13 }
 0x2e1   : > { %p10_p6 = scmp.ge.s32.totalorder %s13_s14, 10   ;;  %s651_s13 = smov %s653_s15 }
 0x2e3   :  { %12 = sbr.rel (!%p10_p6) target bundleno = 2 (0x2), region = 69 }

// kernel: lstm_rgcn_forward.3
= control target key start
LH: loop header
LB: loop body
LE: loop exit
PB: predicated region body
PF: predicated region fallthrough
CT: control target
= control target key end

     0   :  { %s465_s12 = smov 0   ;;  %s467_s13 = smov 0   ;;  %s513_s0 = inlined_call_operand.vmem [shape: f32[8,8,32], index: 0, kind: input, shape index: {}]   ;;  %s514_s1 = inlined_call_operand.vmem [shape: f32[32,128], index: 1, kind: input, shape index: {}]   ;;  %s515_s2 = inlined_call_operand.vmem [shape: f32[1,128], index: 2, kind: input, shape index: {}]   ;;  %s516_s3 = inlined_call_operand.vmem [shape: f32[8,8,128], index: 3, kind: output, shape index: {}]  }
   0x1   :  { %s469_s14 = smov 0  }
   0x2 LB: > { %s22_s15 = sadd.s32 1, %s436_s13  ;;  %p362_p0 = scmp.ge.s32.totalorder %s440_s14, 1  ;;  %s440_s14 = sphi %s469_s14, %s13_s14   ;;  %s436_s13 = sphi %s467_s13, %s518_s13   ;;  %s432_s12 = sphi %s465_s12, %s517_s12  }
   0x3   : > { %p23_p1 = scmp.ge.s32.totalorder %s22_s15, 8  ;;  %p155_p2 = scmp.lt.s32.totalorder %s440_s14, 9 }
   0x5   : > { %s520_s15 = smov (%p23_p1, %s22_s15), 0  ;;  %p156_p3 = pnand %p362_p0, %p155_p2 }
   0x6   : > { %v198_v0 = vld [vmem:[%s514_s1] sm:$0xff] (!%p156_p3)  ;;  %v199_v1 = vld [vmem:[%s514_s1 + $0x8] sm:$0xff] (!%p156_p3)  ;;  %v200_v2 = vld [vmem:[%s514_s1 + $0x10] sm:$0xff] (!%p156_p3)  ;;  %v442_v3 = vmov (!%p156_p3), 0.0|0.0   ;;  %vm443_vm0 = vmmov (!%p156_p3), 0   ;;  %v444_v6 = vmov (!%p156_p3), 0.0  }
   0x7   : > { %159 = sbr.rel (%p156_p3) target bundleno = 233 (0xe9), region = 32  ;;  %385 = vmatprep.subr.bf16.mxu0 (!%p156_p3), %v442_v3  ;;  %v386_v4 = vpack.c.bf16 (!%p156_p3), %v199_v1, %v198_v0  ;;  %v201_v5 = vld [vmem:[%s514_s1 + $0x18] sm:$0xff] (!%p156_p3)  ;;  %382 = vmatprep.mubr.msk.f32.mxu0 (!%p156_p3), %vm443_vm0, %v444_v6  ;;  %p183_p4 = scmp.lt.s32.totalorder (!%p156_p3), %s432_s12, 7  ;;  %vm209_vm1 = vcmask (!%p156_p3), 261120   ;;  %v365_v9 = vld [vmem:[%s515_s2] ss:$0 sm:$0xff] (!%p156_p3) }
   0x8   : > { %v389_v7 = vpack.c.bf16 (!%p156_p3), %v201_v5, %v200_v2 }
   0x9   : > { %387 = vmatpush3.bf16.msra.mxu0 (!%p156_p3), %v386_v4 }
   0xa   : > { %388 = vmatprep.subr.bf16.mxu0 (!%p156_p3), %v442_v3 }
   0xd   : > { %390 = vmatpush3.bf16.msra.mxu0 (!%p156_p3), %v389_v7 }
   0xe   : > { %s522_s12 = smov (!%p183_p4, %s432_s12), 7 }
   0xf   : > { %s363_s24 = sshll.u32 %s522_s12, 3 }
  0x10   : > { %s189_s27 = scalar_lea.vmem %s513_s0, %s363_s24  ;;  %s196_s5 = scalar_lea.vmem %s516_s3, %s363_s24 }
  0x11   : > { %v197_v8 = vld [vmem:[%s189_s27] sm:$0xff] }
  0x12   : > { %383 = vmatmul.mubr.msk.f32.vlgmr.msra.gmra.mrb[0].mxu0 %vm209_vm1, %v197_v8 }
  0xe5   : > { %v279_v10 = vpop.f32.mrb[0].mxu0 }
  0xe6   : > { %v280_v11 = vadd.f32 %v365_v9, %v279_v10  ;;  %v384_v12 = vpop.f32.mrb[1].mxu0 }
  0xe8   : > { %283 = vst [vmem:[%s196_s5] sm:$0xff] %v280_v11 }
  0xe9 PF: > { %s13_s14 = sadd.s32 1, %s440_s14   ;;  %s517_s12 = smov %s436_s13 }
  0xea   : > { %p10_p5 = scmp.ge.s32.totalorder %s13_s14, 10   ;;  %s518_s13 = smov %s520_s15 }
  0xec   :  { %12 = sbr.rel (!%p10_p5) target bundleno = 2 (0x2), region = 62 }

// kernel: lstm_rgcn_forward.5
= control target key start
LH: loop header
LB: loop body
LE: loop exit
PB: predicated region body
PF: predicated region fallthrough
CT: control target
= control target key end

     0   :  { %8 = vsyncpa [#allocation4], 0  ;;  %s567_s12 = smov 0   ;;  %s569_s13 = smov 0   ;;  %s644_s0 = inlined_call_operand.vmem [shape: f32[5,16,32], index: 0, kind: input, shape index: {}]   ;;  %s645_s1 = inlined_call_operand.vmem [shape: f32[5,32,32], index: 1, kind: input, shape index: {}]   ;;  %s646_s2 = inlined_call_operand.vmem [shape: f32[1,32], index: 2, kind: input, shape index: {}]   ;;  %s647_s3 = inlined_call_operand.hbm [shape: f32[16,32], index: 3, kind: output, shape index: {}]  }
   0x1   :  { %s571_s14 = smov 0  }
   0x2 LB: > { %s411_s15 = sadd.s32 4294967295, %s541_s14   ;;  %s23_s16 = sadd.s32 1, %s537_s13  ;;  %s541_s14 = sphi %s571_s14, %s14_s14   ;;  %s537_s13 = sphi %s569_s13, %s650_s13   ;;  %s533_s12 = sphi %s567_s12, %s649_s12  }
   0x3   : > { %p24_p0 = scmp.ge.s32.totalorder %s23_s16, 5  ;;  %p414_p1 = scmp.ge.s32.totalorder %s541_s14, 1 }
   0x4   : > { %p167_p2 = scmp.lt.s32.totalorder %s541_s14, 6 }
   0x5   : > { %s652_s16 = smov (%p24_p0, %s23_s16), 0 }
   0x6   : > { %p168_p3 = pnand %p414_p1, %p167_p2 }
   0x7   : > { %p196_p4 = scmp.lt.s32.totalorder (!%p168_p3), %s533_s12, 4  ;;  %p419_p5 = scmp.ne.s32.totalorder (!%p168_p3), %s533_s12, 0 }
   0x8   : > { %171 = sbr.rel (%p168_p3) target bundleno = 288 (0x120), region = 32 }
   0xf   : > { %s197_s17 = scalar_select %p196_p4, %s533_s12, 4 }
  0x10   : > { %214 = sbr.rel (%p419_p5) target bundleno = 23 (0x17), region = 36  ;;  %vm215_vm0 = vcmask (!%p419_p5), 261120   ;;  %v543_v0 = vmov (!%p419_p5), 0.0  }
  0x11   : > { %s428_s18 = sshll.u32 %s197_s17, 4  ;;  %s429_s19 = sshll.u32 %s197_s17, 5  ;;  %216 = vst.msk [vmem:[#allocation2] sm:$0xff] (!%p419_p5), %vm215_vm0, %v543_v0  ;;  %217 = vst.msk [vmem:[#allocation2 + $0x8] sm:$0xff] (!%p419_p5), %vm215_vm0, %v543_v0 }
  0x12   : > { %s203_s22 = scalar_lea.vmem %s644_s0, %s428_s18  ;;  %s209_s25 = scalar_lea.vmem %s645_s1, %s429_s19 }
  0x17 PF: > { %v222_v1 = vld [vmem:[%s209_s25] sm:$0xff]  ;;  %v223_v2 = vld [vmem:[%s209_s25 + $0x8] sm:$0xff]  ;;  %v224_v3 = vld [vmem:[%s209_s25 + $0x10] sm:$0xff]  ;;  %vm226_vm1 = vcmask 261120   ;;  %p422_p6 = scmp.ne.s32.totalorder %s533_s12, 4 }
  0x18   : > { %v447_v4 = vpack.c.bf16 %v223_v2, %v222_v1  ;;  %v225_v5 = vld [vmem:[%s209_s25 + $0x18] sm:$0xff]  ;;  %v220_v6 = vld [vmem:[%s203_s22] sm:$0xff]  ;;  %v221_v8 = vld [vmem:[%s203_s22 + $0x8] sm:$0xff] }
  0x19   : > { %v451_v7 = vpack.c.bf16 %v225_v5, %v224_v3  ;;  %444 = vmatprep.mubr.msk.f32.mxu0 %vm226_vm1, %v220_v6  ;;  %v219_v9 = vld [vmem:[#allocation2 + $0x8] sm:$0xff]  ;;  %v218_v10 = vld [vmem:[#allocation2] sm:$0xff] }
  0x1a   : > { %448 = vmatprep.subr.bf16.mxu0 %v447_v4  ;;  %v423_v16 = vld [vmem:[%s646_s2] ss:$0 sm:$0xff] (!%p422_p6) }
  0x1b   : > { %450 = vmatpush3.bf16.msra.mxu0 %v447_v4 }
  0x1c   : > { %452 = vmatprep.subr.bf16.mxu0 %v451_v7 }
  0x1f   : > { %454 = vmatpush3.bf16.msra.mxu0 %v451_v7 }
  0x22   : > { %445 = vmatmul.mubr.msk.f32.vlgmr.msra.gmra.mrb[0].mxu0 %vm226_vm1, %v221_v8 }
  0xf3   : > { %315 = sbr.rel (%p422_p6) target bundleno = 262 (0x106), region = 40 }
  0xf5   : > { %v446_v11 = vpop.f32.mrb[0].mxu0 }
  0xf6   : > { %v309_v12 = vadd.f32 %v446_v11, %v219_v9  ;;  %v299_v13 = vpop.f32.mrb[1].mxu0 }
  0xf7   : > { %v308_v14 = vadd.f32 %v299_v13, %v218_v10 }
  0xf8   : > { %311 = vst.msk [vmem:[#allocation2 + $0x8] sm:$0xff] %vm226_vm1, %v309_v12 }
  0xf9   : > { %310 = vst.msk [vmem:[#allocation2] sm:$0xff] %vm226_vm1, %v308_v14 }
  0xff   : > { %v317_v17 = vld [vmem:[#allocation2 + $0x8] sm:$0xff] }
 0x100   : > { %v316_v15 = vld [vmem:[#allocation2] sm:$0xff]  ;;  %v326_v19 = vadd.f32 %v423_v16, %v317_v17 }
 0x101   : > { %v325_v18 = vadd.f32 %v423_v16, %v316_v15 }
 0x102   : > { %v328_v21 = vmax.f32 %v326_v19, 0.0 }
 0x103   : > { %v327_v20 = vmax.f32 %v325_v18, 0.0 }
 0x104   : > { %330 = vst.msk [vmem:[#allocation3 + $0x8] sm:$0xff] %vm226_vm1, %v328_v21 }
 0x105   : > { %329 = vst.msk [vmem:[#allocation3] sm:$0xff] %vm226_vm1, %v327_v20 }
 0x106 PF: > { %p609_p7 = scmp.eq.s32.totalorder %s411_s15, 4  ;;  %s544_s29 = smov [#allocation3]  }
 0x107   : > { %s340_s30 = sshll.u32 %s544_s29, 4  ;;  %s341_s30 = int_to_ptr.vmem [resolvable:$true] %s340_s30 }
 0x108   : > { %s489_s4 = scalar_lea.vmem %s341_s30, 256  ;;  %p496_p11 = scmp.lt.s32.totalorder %s341_s30, %s341_s30 }
 0x109   : > { %p490_p8 = scmp.ne.s32.totalorder %s341_s30, %s489_s4  ;;  %p497_p12 = scmp.lt.s32.totalorder %s489_s4, %s489_s4 }
 0x10b   : > { %p491_p9 = pnand %p490_p8, %p609_p7  ;;  %p498_p13 = por %p497_p12, %p496_p11 }
 0x10d   : > { %p492_p10 = pneg %p491_p9 }
 0x10f   : > { %p499_p0 = pnand %p498_p13, %p492_p10 }
 0x111   : > { %502 = shalt.err (!%p499_p0)
}
 0x112   : > { %s503_s7 = scalar_lea.hbm %s647_s3, 256 }
 0x113   : > { %p504_p1 = scmp.ne.s32.totalorder %s647_s3, %s503_s7  ;;  %p509_p4 = scmp.lt.u32.totalorder %s503_s7, %s647_s3 }
 0x115   : > { %p505_p2 = pnand %p504_p1, %p609_p7 }
 0x117   : > { %p506_p3 = pneg %p505_p2 }
 0x119   : > { %p511_p5 = pnand %p509_p4, %p506_p3 }
 0x11b   : > { %514 = shalt.err (!%p511_p5)
}
 0x11c   : > { %s545_s12 = smov 128   ;;  %s546_s15 = smov 8  }
 0x11d   : > { %456 = dma.vmem_to_hbm [thread:$0]  (%p609_p7), %s341_s30, 256, %s647_s3, [#allocation4], %s545_s12, %s545_s12, %s546_s15  }
 0x11e   : > { %528 = dma.done.wait (%p609_p7), [#allocation4], 256  }
 0x11f   : > { %530 = vsyncadd (%p609_p7), [#allocation4], 4294967040 }
 0x120 PF: > { %s14_s14 = sadd.s32 1, %s541_s14   ;;  %s649_s12 = smov %s537_s13 }
 0x121   : > { %p11_p6 = scmp.ge.s32.totalorder %s14_s14, 7   ;;  %s650_s13 = smov %s652_s16 }
 0x123   :  { %13 = sbr.rel (!%p11_p6) target bundleno = 2 (0x2), region = 71 }
 0x12a   :  { %356 = vsyncpa [#allocation4], 1 }
 0x12b   :  { %358 = vsyncpa [#allocation4 + $0x1], 1 }

</bundles_post_ra>
